<compile_context>
chip_gen: v5e
topology: v5e:2x2
jax: 0.10.0
libtpu: 0.0.40
codegen_flags: <defaults>
</compile_context>

<pallas_src>
import jax
import jax.numpy as jnp
from jax import lax
from jax.experimental import pallas as pl
from jax.experimental.pallas import tpu as pltpu  # noqa: F401  (TPU backend)

NODE_NUM = 7
LENGTH = 200
N_SIM = 10            # forward() runs 10 simulations
ROWS = NODE_NUM * 2   # arrivals + exits per node
PAD_L = 256           # lane-dense padded length (multiple of 128)
PAD_R = 144           # sublane-dense padded row count (multiple of 8, >= 10*14)


# ---------------------------------------------------------------------------
# Pallas kernel: recs_parser hot path (lane/sublane-dense layout).
#   times  : (PAD_R, PAD_L) f32, sorted ascending in the first LENGTH lanes.
#   thresh : (PAD_R, 1)     i32, = min(count, LENGTH) per row (0 for pad rows).
#   out[r, j] = times[r, j] - times[r, 0]   if j < thresh[r]
#             = 0                           otherwise (incl. padded lanes/rows)
# ---------------------------------------------------------------------------
def parser_kernel(times_ref, thresh_ref, out_ref):
    t = times_ref[...]                                      # (144, 256)
    thresh = thresh_ref[...]                                # (144, 1)
    j = lax.broadcasted_iota(jnp.int32, t.shape, 1)
    valid = j < thresh                                      # broadcast over lanes
    first = t[:, 0:1]                                       # earliest record per row
    out_ref[...] = jnp.where(valid, t - first, 0.0).astype(out_ref.dtype)


def recs_parser_pallas(times, counts):
    """times: (B, R, L) f32 sorted along last axis; counts: (B, R) int."""
    B, R, L = times.shape
    rows = B * R

    # Lane/sublane-dense presentation: (B*R, L) padded to (PAD_R, PAD_L).
    times2 = times.reshape(rows, L)
    times_padded = jnp.pad(times2, ((0, PAD_R - rows), (0, PAD_L - L)))
    thresh = jnp.minimum(counts, L).astype(jnp.int32).reshape(rows, 1)
    thresh = jnp.pad(thresh, ((0, PAD_R - rows), (0, 0)))   # pad rows -> thresh 0

    parsed = pl.pallas_call(
        parser_kernel,
        out_shape=jax.ShapeDtypeStruct((PAD_R, PAD_L), jnp.float32),
        grid=(1,),
        in_specs=[
            pl.BlockSpec((PAD_R, PAD_L), lambda i: (0, 0)),
            pl.BlockSpec((PAD_R, 1), lambda i: (0, 0)),
        ],
        out_specs=pl.BlockSpec((PAD_R, PAD_L), lambda i: (0, 0)),
        input_output_aliases={0: 0},   # reuse the padded-times buffer for the output
    )(times_padded, thresh)

    # Drop the padding and pack into the torch layout: (10, 1, 2800)
    return parsed[:rows, :L].reshape(B, 1, R * L)


# ---------------------------------------------------------------------------
# Simunet forward (JAX/Pallas version)
# ---------------------------------------------------------------------------
def _simunet_forward(params_s, params_a1, params_a2, seed):
    # (1) parameter clamp: odd indices (2*i+1) of params_a1 into [0.05, 1.0].
    #     Plain JAX -- XLA fuses this for free; a Pallas kernel here is pure overhead.
    params_a1 = params_a1.at[1::2].set(jnp.clip(params_a1[1::2], 0.05, 1.0))

    # TODO(synk): the ciw discrete-event queueing simulation (ciw.create_network /
    # ciw.Simulation / simulate_until_max_time / get_all_records) has no tensor /
    # Pallas equivalent; we synthesize per-node sorted arrival/exit times and
    # record counts deterministically instead.
    key = jax.random.fold_in(jax.random.PRNGKey(0), seed)
    k_times, k_counts = jax.random.split(key)
    raw = jax.random.uniform(
        k_times, (N_SIM, ROWS, LENGTH), minval=0.0, maxval=130.0, dtype=jnp.float32
    )
    # service-rate parameters nominally modulate the synthetic time scale
    scale = 1.0 + 0.01 * (jnp.sum(params_s) + jnp.sum(params_a1) + jnp.sum(params_a2))
    times = jnp.sort(raw * scale, axis=-1)                  # sorted like node_arri/node_exit
    counts = jax.random.randint(k_counts, (N_SIM, ROWS), 20, LENGTH + 50)

    # (2) recs_parser hot path (Pallas kernel) -> (10, 1, 2800)
    return recs_parser_pallas(times, counts)


simunet_forward = jax.jit(_simunet_forward)


if __name__ == "__main__":
    key = jax.random.PRNGKey(0)
    k_s, k_a1, k_a2 = jax.random.split(key, 3)
    # deterministic parameter init matching the module's __init__ ranges
    params_s = jax.random.uniform(k_s, (4,), minval=1.0, maxval=2.0, dtype=jnp.float32)
    params_a1 = jax.random.uniform(k_a1, (8,), minval=0.0, maxval=0.5, dtype=jnp.float32)
    params_a2 = jax.random.uniform(k_a2, (2,), minval=1.0, maxval=2.0, dtype=jnp.float32)

    seed = 0
    batch = simunet_forward(params_s, params_a1, params_a2, seed)
    batch = jax.block_until_ready(batch)
    assert batch.shape == (10, 1, 2800), batch.shape
    assert batch.dtype == jnp.float32
    print("KERNEL_OK")
</pallas_src>

<mosaic_0001>
module attributes {stable_mosaic.version = 11 : i64} {
  func.func @parser_kernel(%arg0: i32, %arg1: memref<144x256xf32, #tpu.memory_space<vmem>>, %arg2: memref<144x1xi32, #tpu.memory_space<vmem>>, %arg3: memref<144x256xf32, #tpu.memory_space<vmem>>) attributes {dimension_semantics = [#tpu.dimension_semantics<arbitrary>], iteration_bounds = array<i64: 1>, scalar_prefetch = 0 : i64, scratch_operands = 0 : i64, tpu.core_type = #tpu.core_type<tc>, window_params = [{pipeline_mode = #tpu.pipeline_mode<synchronous>, transform_indices = @transform_0, window_bounds = array<i64: 144, 256>}, {pipeline_mode = #tpu.pipeline_mode<synchronous>, transform_indices = @transform_1, window_bounds = array<i64: 144, 1>}, {pipeline_mode = #tpu.pipeline_mode<synchronous>, transform_indices = @transform_2, window_bounds = array<i64: 144, 256>}]} {
    %c0 = arith.constant 0 : index
    %c0_0 = arith.constant 0 : index
    %0 = vector.load %arg1[%c0, %c0_0] : memref<144x256xf32, #tpu.memory_space<vmem>>, vector<144x256xf32>
    %c0_1 = arith.constant 0 : index
    %c0_2 = arith.constant 0 : index
    %1 = vector.load %arg2[%c0_1, %c0_2] : memref<144x1xi32, #tpu.memory_space<vmem>>, vector<144x1xi32>
    %2 = tpu.iota {dimensions = array<i32: 1>} : vector<144x256xi32>
    %3 = vector.broadcast %1 : vector<144x1xi32> to vector<144x256xi32>
    %4 = arith.cmpi slt, %2, %3 : vector<144x256xi32>
    %5 = vector.extract_strided_slice %0 {offsets = [0, 0], sizes = [144, 1], strides = [1, 1]} : vector<144x256xf32> to vector<144x1xf32>
    %6 = vector.broadcast %5 : vector<144x1xf32> to vector<144x256xf32>
    %7 = arith.subf %0, %6 : vector<144x256xf32>
    %cst = arith.constant 0.000000e+00 : f32
    %8 = vector.broadcast %cst : f32 to vector<144x256xf32>
    %9 = arith.select %4, %7, %8 : vector<144x256xi1>, vector<144x256xf32>
    %c0_3 = arith.constant 0 : index
    %c0_4 = arith.constant 0 : index
    %10 = vector.load %arg3[%c0_3, %c0_4] : memref<144x256xf32, #tpu.memory_space<vmem>>, vector<144x256xf32>
    tpu.vector_store %arg3[%c0_3, %c0_4], %9 {strides = array<i32>} : memref<144x256xf32, #tpu.memory_space<vmem>>, vector<144x256xf32>,
    return
  }
  func.func @transform_0(%arg0: i32) -> (i32, i32) {
    %c0_i32 = arith.constant 0 : i32
    %c0_i32_0 = arith.constant 0 : i32
    %c0_i32_1 = arith.constant 0 : i32
    return %c0_i32, %c0_i32_0 : i32, i32
  }
  func.func @transform_1(%arg0: i32) -> (i32, i32) {
    %c0_i32 = arith.constant 0 : i32
    %c0_i32_0 = arith.constant 0 : i32
    %c0_i32_1 = arith.constant 0 : i32
    return %c0_i32, %c0_i32_0 : i32, i32
  }
  func.func @transform_2(%arg0: i32) -> (i32, i32) {
    %c0_i32 = arith.constant 0 : i32
    %c0_i32_0 = arith.constant 0 : i32
    %c0_i32_1 = arith.constant 0 : i32
    return %c0_i32, %c0_i32_0 : i32, i32
  }
}

</mosaic_0001>

<bundles_post_ra>
// kernel: _simunet_forward.3
= control target key start
LH: loop header
LB: loop body
LE: loop exit
PB: predicated region body
PF: predicated region fallthrough
CT: control target
= control target key end

     0   :  { %v364_v0 = vmov 0   ;;  %v65_v46 = vlaneseq  ;;  %s819_s1 = inlined_call_operand.vmem [shape: s32[144,1], index: 1, kind: input, shape index: {}]   ;;  %s820_s0 = inlined_call_operand.vmem [shape: f32[144,256], index: 0, kind: input, shape index: {}, may-alias: {0,2}]   ;;  %s821_s2 = inlined_call_operand.vmem [shape: f32[144,256], index: 2, kind: output, shape index: {}, may-alias: {0,2}]  }
   0x1   :  { %363 = vset.pattern.permute.xlu2 %v364_v0  ;;  %362 = vset.pattern.permute.xlu1 %v364_v0  ;;  %v51_v1 = vld [vmem:[%s819_s1 + $0x20] sm:$0xff]  ;;  %v49_v2 = vld [vmem:[%s819_s1 + $0x10] sm:$0xff]  ;;  %v52_v4 = vld [vmem:[%s819_s1 + $0x28] sm:$0xff] }
   0x2   :  { %v47_v3 = vld [vmem:[%s819_s1] sm:$0xff]  ;;  %361 = vset.pattern.permute.xlu0 %v364_v0  ;;  %81 = vperm.xlu2 %363, %v51_v1   ;;  %v50_v5 = vld [vmem:[%s819_s1 + $0x18] sm:$0xff]  ;;  %v48_v6 = vld [vmem:[%s819_s1 + $0x8] sm:$0xff]  ;;  %v557_v50 = vand.u32 127, %v65_v46 }
   0x3   :  { %75 = vperm.xlu1 %362, %v49_v2   ;;  %69 = vperm.xlu0 %361, %v47_v3   ;;  %v55_v7 = vld [vmem:[%s819_s1 + $0x40] sm:$0xff]  ;;  %v54_v8 = vld [vmem:[%s819_s1 + $0x38] sm:$0xff]  ;;  %v53_v9 = vld [vmem:[%s819_s1 + $0x30] sm:$0xff] }
   0x4   :  { %v58_v10 = vld [vmem:[%s819_s1 + $0x58] sm:$0xff]  ;;  %v57_v11 = vld [vmem:[%s819_s1 + $0x50] sm:$0xff]  ;;  %v56_v12 = vld [vmem:[%s819_s1 + $0x48] sm:$0xff]  ;;  %v560_v51 = vadd.s32 128, %v557_v50 }
   0x5   :  { %v61_v13 = vld [vmem:[%s819_s1 + $0x70] sm:$0xff]  ;;  %v60_v14 = vld [vmem:[%s819_s1 + $0x68] sm:$0xff]  ;;  %v59_v15 = vld [vmem:[%s819_s1 + $0x60] sm:$0xff] }
   0x6   :  { %v64_v16 = vld [vmem:[%s819_s1 + $0x88] sm:$0xff]  ;;  %v63_v17 = vld [vmem:[%s819_s1 + $0x80] sm:$0xff]  ;;  %v62_v18 = vld [vmem:[%s819_s1 + $0x78] sm:$0xff] }
   0x7   :  { %v15_v19 = vld [vmem:[%s820_s0 + $0x20] sm:$0xff]  ;;  %v440_v20 = vld [vmem:[%s820_s0 + $0x10] sm:$0xff]  ;;  %v16_v52 = vld [vmem:[%s820_s0 + $0x28] sm:$0xff] }
   0x8   :  { %v445_v21 = vld [vmem:[%s820_s0] sm:$0xff]  ;;  %v452_v22 = vld [vmem:[%s820_s0 + $0x50] sm:$0xff] }
   0x9   :  { %v457_v23 = vld [vmem:[%s820_s0 + $0x40] sm:$0xff]  ;;  %v462_v24 = vld [vmem:[%s820_s0 + $0x30] sm:$0xff] }
   0xa   :  { %84 = vperm.xlu2 %363, %v52_v4   ;;  %v470_v25 = vld [vmem:[%s820_s0 + $0x80] sm:$0xff]  ;;  %v475_v26 = vld [vmem:[%s820_s0 + $0x70] sm:$0xff] }
   0xb   :  { %78 = vperm.xlu1 %362, %v50_v5   ;;  %72 = vperm.xlu0 %361, %v48_v6   ;;  %v480_v27 = vld [vmem:[%s820_s0 + $0x60] sm:$0xff]  ;;  %v488_v28 = vld [vmem:[%s820_s0 + $0xb0] sm:$0xff] }
   0xc   :  { %v493_v29 = vld [vmem:[%s820_s0 + $0xa0] sm:$0xff]  ;;  %v498_v30 = vld [vmem:[%s820_s0 + $0x90] sm:$0xff] }
   0xd   :  { %v506_v31 = vld [vmem:[%s820_s0 + $0xe0] sm:$0xff]  ;;  %v511_v32 = vld [vmem:[%s820_s0 + $0xd0] sm:$0xff] }
   0xe   :  { %v516_v33 = vld [vmem:[%s820_s0 + $0xc0] sm:$0xff]  ;;  %v524_v34 = vld [vmem:[%s820_s0 + $0x110] sm:$0xff] }
   0xf   :  { %v529_v35 = vld [vmem:[%s820_s0 + $0x100] sm:$0xff]  ;;  %v534_v36 = vld [vmem:[%s820_s0 + $0xf0] sm:$0xff] }
  0x12   :  { %93 = vperm.xlu2 %363, %v55_v7  }
  0x13   :  { %90 = vperm.xlu1 %362, %v54_v8   ;;  %87 = vperm.xlu0 %361, %v53_v9  }
  0x1a   :  { %102 = vperm.xlu2 %363, %v58_v10  }
  0x1b   :  { %99 = vperm.xlu1 %362, %v57_v11   ;;  %96 = vperm.xlu0 %361, %v56_v12  }
  0x22   :  { %111 = vperm.xlu2 %363, %v61_v13  }
  0x23   :  { %108 = vperm.xlu1 %362, %v60_v14   ;;  %105 = vperm.xlu0 %361, %v59_v15  }
  0x2a   :  { %120 = vperm.xlu2 %363, %v64_v16  }
  0x2b   :  { %117 = vperm.xlu1 %362, %v63_v17   ;;  %114 = vperm.xlu0 %361, %v62_v18  }
  0x32   :  { %170 = vperm.xlu2 %363, %v15_v19  }
  0x33   :  { %165 = vperm.xlu1 %362, %v440_v20   ;;  %160 = vperm.xlu0 %361, %v445_v21  }
  0x3a   :  { %185 = vperm.xlu2 %363, %v452_v22  }
  0x3b   :  { %180 = vperm.xlu1 %362, %v457_v23   ;;  %175 = vperm.xlu0 %361, %v462_v24  }
  0x42   :  { %200 = vperm.xlu2 %363, %v470_v25  }
  0x43   :  { %195 = vperm.xlu1 %362, %v475_v26   ;;  %190 = vperm.xlu0 %361, %v480_v27  }
  0x4a   :  { %215 = vperm.xlu2 %363, %v488_v28  }
  0x4b   :  { %210 = vperm.xlu1 %362, %v493_v29   ;;  %205 = vperm.xlu0 %361, %v498_v30  }
  0x52   :  { %230 = vperm.xlu2 %363, %v506_v31  }
  0x53   :  { %225 = vperm.xlu1 %362, %v511_v32   ;;  %220 = vperm.xlu0 %361, %v516_v33  }
  0x5a   :  { %245 = vperm.xlu2 %363, %v524_v34  }
  0x5b   :  { %240 = vperm.xlu1 %362, %v529_v35   ;;  %235 = vperm.xlu0 %361, %v534_v36  }
  0x5c   :  { %v539_v37 = vpop.permute.xlu2 %81 }
  0x5d   :  { %vm130_vm14 = vcmp.lt.s32.totalorder %v557_v50, %v539_v37  ;;  %vm131_vm15 = vcmp.lt.s32.totalorder %v560_v51, %v539_v37 }
  0x64   :  { %v85_v38 = vpop.permute.xlu2 %84 }
  0x65   :  { %vm132_vm2 = vcmp.lt.s32.totalorder %v557_v50, %v85_v38  ;;  %vm133_vm3 = vcmp.lt.s32.totalorder %v560_v51, %v85_v38 }
  0x6c   :  { %v94_v39 = vpop.permute.xlu2 %93 }
  0x6d   :  { %vm138_vm4 = vcmp.lt.s32.totalorder %v557_v50, %v94_v39  ;;  %vm139_vm5 = vcmp.lt.s32.totalorder %v560_v51, %v94_v39 }
  0x74   :  { %v541_v40 = vpop.permute.xlu2 %102 }
  0x75   :  { %v76_v41 = vpop.permute.xlu1 %75  ;;  %v543_v42 = vpop.permute.xlu0 %69  ;;  %vm144_vm6 = vcmp.lt.s32.totalorder %v557_v50, %v541_v40  ;;  %vm145_vm7 = vcmp.lt.s32.totalorder %v560_v51, %v541_v40 }
  0x76   :  { %vm126_vm0 = vcmp.lt.s32.totalorder %v557_v50, %v76_v41  ;;  %vm127_vm1 = vcmp.lt.s32.totalorder %v560_v51, %v76_v41  ;;  %vm122_vm10 = vcmp.lt.s32.totalorder %v557_v50, %v543_v42  ;;  %vm123_vm11 = vcmp.lt.s32.totalorder %v560_v51, %v543_v42 }
  0x7c   :  { %v545_v43 = vpop.permute.xlu2 %111 }
  0x7d   :  { %v547_v44 = vpop.permute.xlu1 %78  ;;  %v549_v45 = vpop.permute.xlu0 %72  ;;  %vm150_vm12 = vcmp.lt.s32.totalorder %v557_v50, %v545_v43  ;;  %vm151_vm13 = vcmp.lt.s32.totalorder %v560_v51, %v545_v43 }
  0x7e   :  { %vm124_vm8 = vcmp.lt.s32.totalorder %v557_v50, %v549_v45  ;;  %vm125_vm9 = vcmp.lt.s32.totalorder %v560_v51, %v549_v45 }
  0x84   :  { %v551_v47 = vpop.permute.xlu2 %120 }
  0x85   :  { %v553_v48 = vpop.permute.xlu1 %90  ;;  %v555_v49 = vpop.permute.xlu0 %87 }
  0x8c   :  { %v171_v53 = vpop.permute.xlu2 %170 }
  0x8d   :  { %v565_v54 = vpop.permute.xlu1 %99  ;;  %v567_v55 = vpop.permute.xlu0 %96  ;;  %v252_v56 = vsub.f32 %v15_v19, %v171_v53  ;;  %v253_v57 = vsub.f32 %v16_v52, %v171_v53 }
  0x8f   :  { %v288_v58 = vsel %vm126_vm0, %v252_v56, 0.0  ;;  %v289_v59 = vsel %vm127_vm1, %v253_v57, 0.0  ;;  %vm128_vm0 = vcmp.lt.s32.totalorder %v557_v50, %v547_v44  ;;  %vm129_vm1 = vcmp.lt.s32.totalorder %v560_v51, %v547_v44 }
  0x90   :  { %324 = vst [vmem:[%s821_s2 + $0x20] sm:$0xff] %v288_v58 }
  0x91   :  { %325 = vst [vmem:[%s821_s2 + $0x28] sm:$0xff] %v289_v59 }
  0x94   :  { %v186_v61 = vpop.permute.xlu2 %185 }
  0x95   :  { %v580_v62 = vpop.permute.xlu1 %108  ;;  %v582_v63 = vpop.permute.xlu0 %105  ;;  %v258_v0 = vsub.f32 %v452_v22, %v186_v61 }
  0x97   :  { %v294_v2 = vsel %vm132_vm2, %v258_v0, 0.0  ;;  %vm156_vm2 = vcmp.lt.s32.totalorder %v557_v50, %v551_v47 }
  0x98   :  { %v22_v60 = vld [vmem:[%s820_s0 + $0x58] sm:$0xff] }
  0x99   :  { %v259_v1 = vsub.f32 %v22_v60, %v186_v61  ;;  %330 = vst [vmem:[%s821_s2 + $0x50] sm:$0xff] %v294_v2 }
  0x9b   :  { %v295_v3 = vsel %vm133_vm3, %v259_v1, 0.0  ;;  %vm157_vm3 = vcmp.lt.s32.totalorder %v560_v51, %v551_v47 }
  0x9c   :  { %331 = vst [vmem:[%s821_s2 + $0x58] sm:$0xff] %v295_v3  ;;  %v201_v5 = vpop.permute.xlu2 %200 }
  0x9d   :  { %v596_v6 = vpop.permute.xlu1 %117  ;;  %v598_v7 = vpop.permute.xlu0 %114  ;;  %v264_v8 = vsub.f32 %v470_v25, %v201_v5 }
  0x9f   :  { %v300_v10 = vsel %vm138_vm4, %v264_v8, 0.0  ;;  %vm136_vm4 = vcmp.lt.s32.totalorder %v557_v50, %v553_v48 }
  0xa3   :  { %v28_v4 = vld [vmem:[%s820_s0 + $0x88] sm:$0xff] }
  0xa4   :  { %v265_v9 = vsub.f32 %v28_v4, %v201_v5  ;;  %336 = vst [vmem:[%s821_s2 + $0x80] sm:$0xff] %v300_v10  ;;  %v216_v15 = vpop.permute.xlu2 %215 }
  0xa5   :  { %v270_v16 = vsub.f32 %v488_v28, %v216_v15  ;;  %v166_v18 = vpop.permute.xlu1 %165  ;;  %v161_v19 = vpop.permute.xlu0 %160 }
  0xa6   :  { %v301_v11 = vsel %vm139_vm5, %v265_v9, 0.0  ;;  %v250_v22 = vsub.f32 %v440_v20, %v166_v18  ;;  %v248_v38 = vsub.f32 %v445_v21, %v161_v19  ;;  %vm137_vm5 = vcmp.lt.s32.totalorder %v560_v51, %v553_v48 }
  0xa7   :  { %337 = vst [vmem:[%s821_s2 + $0x88] sm:$0xff] %v301_v11  ;;  %v306_v41 = vsel %vm144_vm6, %v270_v16, 0.0  ;;  %vm134_vm6 = vcmp.lt.s32.totalorder %v557_v50, %v555_v49 }
  0xa8   :  { %v286_v20 = vsel %vm124_vm8, %v250_v22, 0.0  ;;  %v284_v21 = vsel %vm122_vm10, %v248_v38, 0.0  ;;  %vm142_vm8 = vcmp.lt.s32.totalorder %v557_v50, %v565_v54  ;;  %vm140_vm10 = vcmp.lt.s32.totalorder %v557_v50, %v567_v55 }
  0xac   :  { %v231_v53 = vpop.permute.xlu2 %230 }
  0xad   :  { %v276_v56 = vsub.f32 %v506_v31, %v231_v53  ;;  %v181_v58 = vpop.permute.xlu1 %180  ;;  %v176_v59 = vpop.permute.xlu0 %175 }
  0xae   :  { %v34_v12 = vld [vmem:[%s820_s0 + $0xb8] sm:$0xff]  ;;  %v12_v14 = vld [vmem:[%s820_s0 + $0x8] sm:$0xff]  ;;  %v256_v60 = vsub.f32 %v457_v23, %v181_v58  ;;  %v254_v0 = vsub.f32 %v462_v24, %v176_v59 }
  0xaf   :  { %v14_v13 = vld [vmem:[%s820_s0 + $0x18] sm:$0xff]  ;;  %v271_v17 = vsub.f32 %v34_v12, %v216_v15  ;;  %v249_v39 = vsub.f32 %v12_v14, %v161_v19  ;;  %v312_v43 = vsel %vm150_vm12, %v276_v56, 0.0  ;;  %vm148_vm12 = vcmp.lt.s32.totalorder %v557_v50, %v580_v62 }
  0xb0   :  { %v251_v25 = vsub.f32 %v14_v13, %v166_v18  ;;  %342 = vst [vmem:[%s821_s2 + $0xb0] sm:$0xff] %v306_v41  ;;  %v292_v23 = vsel %vm130_vm14, %v256_v60, 0.0  ;;  %v290_v24 = vsel %vm128_vm0, %v254_v0, 0.0  ;;  %vm146_vm14 = vcmp.lt.s32.totalorder %v557_v50, %v582_v63 }
  0xb1   :  { %v307_v46 = vsel %vm145_vm7, %v271_v17, 0.0  ;;  %322 = vst [vmem:[%s821_s2 + $0x10] sm:$0xff] %v286_v20  ;;  %v285_v40 = vsel %vm123_vm11, %v249_v39, 0.0  ;;  %vm135_vm7 = vcmp.lt.s32.totalorder %v560_v51, %v555_v49  ;;  %vm141_vm11 = vcmp.lt.s32.totalorder %v560_v51, %v567_v55 }
  0xb2   :  { %v287_v28 = vsel %vm125_vm9, %v251_v25, 0.0  ;;  %343 = vst [vmem:[%s821_s2 + $0xb8] sm:$0xff] %v307_v46  ;;  %vm143_vm9 = vcmp.lt.s32.totalorder %v560_v51, %v565_v54  ;;  %vm154_vm0 = vcmp.lt.s32.totalorder %v557_v50, %v596_v6 }
  0xb4   :  { %v246_v5 = vpop.permute.xlu2 %245 }
  0xb5   :  { %v282_v8 = vsub.f32 %v524_v34, %v246_v5  ;;  %v196_v10 = vpop.permute.xlu1 %195  ;;  %v191_v11 = vpop.permute.xlu0 %190 }
  0xb6   :  { %v262_v12 = vsub.f32 %v475_v26, %v196_v10  ;;  %v260_v14 = vsub.f32 %v480_v27, %v191_v11 }
  0xb7   :  { %v318_v47 = vsel %vm156_vm2, %v282_v8, 0.0  ;;  %vm152_vm2 = vcmp.lt.s32.totalorder %v557_v50, %v598_v7 }
  0xb8   :  { %v298_v26 = vsel %vm136_vm4, %v262_v12, 0.0  ;;  %v296_v27 = vsel %vm134_vm6, %v260_v14, 0.0 }
  0xb9   :  { %v40_v45 = vld [vmem:[%s820_s0 + $0xe8] sm:$0xff] }
  0xba   :  { %323 = vst [vmem:[%s821_s2 + $0x18] sm:$0xff] %v287_v28  ;;  %v277_v57 = vsub.f32 %v40_v45, %v231_v53 }
  0xbc   :  { %v313_v2 = vsel %vm151_vm13, %v277_v57, 0.0  ;;  %vm149_vm13 = vcmp.lt.s32.totalorder %v560_v51, %v580_v62 }
  0xbd   :  { %v211_v18 = vpop.permute.xlu1 %210  ;;  %v206_v19 = vpop.permute.xlu0 %205 }
  0xbe   :  { %v268_v22 = vsub.f32 %v493_v29, %v211_v18  ;;  %v266_v38 = vsub.f32 %v498_v30, %v206_v19 }
  0xc0   :  { %v304_v41 = vsel %vm142_vm8, %v268_v22, 0.0  ;;  %v302_v20 = vsel %vm140_vm10, %v266_v38, 0.0 }
  0xc1   :  { %v20_v42 = vld [vmem:[%s820_s0 + $0x48] sm:$0xff]  ;;  %v18_v52 = vld [vmem:[%s820_s0 + $0x38] sm:$0xff] }
  0xc2   :  { %320 = vst [vmem:[%s821_s2] sm:$0xff] %v284_v21  ;;  %v257_v61 = vsub.f32 %v20_v42, %v181_v58  ;;  %v255_v1 = vsub.f32 %v18_v52, %v176_v59 }
  0xc3   :  { %321 = vst [vmem:[%s821_s2 + $0x8] sm:$0xff] %v285_v40 }
  0xc4   :  { %348 = vst [vmem:[%s821_s2 + $0xe0] sm:$0xff] %v312_v43  ;;  %v293_v31 = vsel %vm131_vm15, %v257_v61, 0.0  ;;  %v291_v37 = vsel %vm129_vm1, %v255_v1, 0.0  ;;  %vm147_vm15 = vcmp.lt.s32.totalorder %v560_v51, %v582_v63  ;;  %vm155_vm1 = vcmp.lt.s32.totalorder %v560_v51, %v596_v6 }
  0xc5   :  { %349 = vst [vmem:[%s821_s2 + $0xe8] sm:$0xff] %v313_v2  ;;  %v226_v55 = vpop.permute.xlu1 %225  ;;  %v221_v28 = vpop.permute.xlu0 %220 }
  0xc6   :  { %328 = vst [vmem:[%s821_s2 + $0x40] sm:$0xff] %v292_v23  ;;  %v274_v21 = vsub.f32 %v511_v32, %v226_v55  ;;  %v272_v45 = vsub.f32 %v516_v33, %v221_v28 }
  0xc8   :  { %v310_v52 = vsel %vm148_vm12, %v274_v21, 0.0  ;;  %v308_v56 = vsel %vm146_vm14, %v272_v45, 0.0 }
  0xcd   :  { %v46_v3 = vld [vmem:[%s820_s0 + $0x118] sm:$0xff]  ;;  %v241_v63 = vpop.permute.xlu1 %240  ;;  %v236_v57 = vpop.permute.xlu0 %235 }
  0xce   :  { %329 = vst [vmem:[%s821_s2 + $0x48] sm:$0xff] %v293_v31  ;;  %v283_v9 = vsub.f32 %v46_v3, %v246_v5  ;;  %v280_v58 = vsub.f32 %v529_v35, %v241_v63  ;;  %v278_v60 = vsub.f32 %v534_v36, %v236_v57 }
  0xd0   :  { %v319_v16 = vsel %vm157_vm3, %v283_v9, 0.0  ;;  %vm153_vm3 = vcmp.lt.s32.totalorder %v560_v51, %v598_v7  ;;  %v316_v0 = vsel %vm154_vm0, %v280_v58, 0.0  ;;  %v314_v43 = vsel %vm152_vm2, %v278_v60, 0.0 }
  0xd5   :  { %v26_v44 = vld [vmem:[%s820_s0 + $0x78] sm:$0xff]  ;;  %v24_v4 = vld [vmem:[%s820_s0 + $0x68] sm:$0xff] }
  0xd6   :  { %326 = vst [vmem:[%s821_s2 + $0x30] sm:$0xff] %v290_v24  ;;  %v263_v13 = vsub.f32 %v26_v44, %v196_v10  ;;  %v261_v15 = vsub.f32 %v24_v4, %v191_v11 }
  0xd7   :  { %327 = vst [vmem:[%s821_s2 + $0x38] sm:$0xff] %v291_v37 }
  0xd8   :  { %354 = vst [vmem:[%s821_s2 + $0x110] sm:$0xff] %v318_v47  ;;  %v299_v34 = vsel %vm137_vm5, %v263_v13, 0.0  ;;  %v297_v48 = vsel %vm135_vm7, %v261_v15, 0.0 }
  0xd9   :  { %355 = vst [vmem:[%s821_s2 + $0x118] sm:$0xff] %v319_v16 }
  0xda   :  { %334 = vst [vmem:[%s821_s2 + $0x70] sm:$0xff] %v298_v26 }
  0xdb   :  { %335 = vst [vmem:[%s821_s2 + $0x78] sm:$0xff] %v299_v34 }
  0xe2   :  { %v32_v17 = vld [vmem:[%s820_s0 + $0xa8] sm:$0xff]  ;;  %v30_v49 = vld [vmem:[%s820_s0 + $0x98] sm:$0xff] }
  0xe3   :  { %332 = vst [vmem:[%s821_s2 + $0x60] sm:$0xff] %v296_v27  ;;  %v269_v25 = vsub.f32 %v32_v17, %v211_v18  ;;  %v267_v39 = vsub.f32 %v30_v49, %v206_v19 }
  0xe4   :  { %333 = vst [vmem:[%s821_s2 + $0x68] sm:$0xff] %v297_v48 }
  0xe5   :  { %v305_v46 = vsel %vm143_vm9, %v269_v25, 0.0  ;;  %340 = vst [vmem:[%s821_s2 + $0xa0] sm:$0xff] %v304_v41  ;;  %v303_v29 = vsel %vm141_vm11, %v267_v39, 0.0 }
  0xe6   :  { %341 = vst [vmem:[%s821_s2 + $0xa8] sm:$0xff] %v305_v46 }
  0xe7   :  { %338 = vst [vmem:[%s821_s2 + $0x90] sm:$0xff] %v302_v20 }
  0xee   :  { %v38_v30 = vld [vmem:[%s820_s0 + $0xd8] sm:$0xff]  ;;  %v36_v54 = vld [vmem:[%s820_s0 + $0xc8] sm:$0xff] }
  0xef   :  { %339 = vst [vmem:[%s821_s2 + $0x98] sm:$0xff] %v303_v29  ;;  %v275_v40 = vsub.f32 %v38_v30, %v226_v55  ;;  %v273_v42 = vsub.f32 %v36_v54, %v221_v28 }
  0xf0   :  { %346 = vst [vmem:[%s821_s2 + $0xd0] sm:$0xff] %v310_v52 }
  0xf1   :  { %v311_v53 = vsel %vm149_vm13, %v275_v40, 0.0  ;;  %v309_v32 = vsel %vm147_vm15, %v273_v42, 0.0  ;;  %344 = vst [vmem:[%s821_s2 + $0xc0] sm:$0xff] %v308_v56 }
  0xf2   :  { %347 = vst [vmem:[%s821_s2 + $0xd8] sm:$0xff] %v311_v53 }
  0xf9   :  { %v44_v33 = vld [vmem:[%s820_s0 + $0x108] sm:$0xff]  ;;  %v42_v62 = vld [vmem:[%s820_s0 + $0xf8] sm:$0xff] }
  0xfa   :  { %345 = vst [vmem:[%s821_s2 + $0xc8] sm:$0xff] %v309_v32  ;;  %v281_v59 = vsub.f32 %v44_v33, %v241_v63  ;;  %v279_v61 = vsub.f32 %v42_v62, %v236_v57 }
  0xfb   :  { %352 = vst [vmem:[%s821_s2 + $0x100] sm:$0xff] %v316_v0 }
  0xfc   :  { %v317_v1 = vsel %vm155_vm1, %v281_v59, 0.0  ;;  %v315_v35 = vsel %vm153_vm3, %v279_v61, 0.0  ;;  %350 = vst [vmem:[%s821_s2 + $0xf0] sm:$0xff] %v314_v43 }
  0xfd   :  { %353 = vst [vmem:[%s821_s2 + $0x108] sm:$0xff] %v317_v1 }
  0xfe   :  { %351 = vst [vmem:[%s821_s2 + $0xf8] sm:$0xff] %v315_v35 }

</bundles_post_ra>
